<compile_context>
chip_gen: v7x
topology: tpu7x:2x2x1
jax: 0.10.0
libtpu: 0.0.40
codegen_flags: <defaults>
</compile_context>

<pallas_src>
import jax
import jax.numpy as jnp
from jax import lax
from jax.experimental import pallas as pl
from jax.experimental.pallas import tpu as pltpu
import numpy as np

# ---------------- problem sizes (small, consistent with the module) ----------------
B = 2
C_IN = 4
H = 16
W = 16
C_OUT = 32                    # must be >= 16 so SE reduction (//16) is >= 1
KH = 10
STRIDE_H = 2
PAD_H = 5
H_OUT = (H + 2 * PAD_H - KH) // STRIDE_H + 1   # = 9
HW = H_OUT * W                                  # = 144
HW_PAD = 256                                    # per-batch lane padding (multiple of 128)
K = C_IN * KH                                   # = 40
C_RED = C_OUT // 16                             # = 2
BN_EPS = 1e-5


# ---------------- Pallas kernel: one conv-matmul + BN + ReLU + SE ----------------
# Handles `npb` batch elements resident in this invocation (npb = out_ref.shape[0]):
#   npb = B  on the grid-less single-call path (v5e/v6e),
#   npb = 1  on the per-batch parallel-grid path (v7x, one batch per TensorCore).
def freqconv_se_kernel(cols_ref, wT_ref, params_ref, out_ref):
    # Single MXU push for every batch element in this step: (C_OUT,K)@(K,npb*HW_PAD).
    z_all = jnp.dot(wT_ref[...], cols_ref[...],
                    preferred_element_type=jnp.float32)          # (C_OUT, npb*HW_PAD) f32

    p = params_ref[...]                                          # (C_OUT, 2 + 2*C_RED) f32
    scale = p[:, 0:1]                                            # BN-folded scale
    shift = p[:, 1:2]                                            # BN-folded shift (incl. conv bias)
    w1 = p[:, 2:2 + C_RED]                                       # se_w1            (C_OUT, C_RED)
    w2t = p[:, 2 + C_RED:2 + 2 * C_RED]                          # se_w2.T          (C_OUT, C_RED)

    # folded conv-bias + BatchNorm (inference) affine, then ReLU.
    # (also touches the zero-padded lanes; they are never pooled or stored)
    z_all = jnp.maximum(z_all * scale + shift, 0.0)
    # TODO(synk): nn.Dropout(0.25) is identity here (eval-mode semantics only).

    npb = out_ref.shape[0]
    inv_hw = 1.0 / HW
    for b in range(npb):                                         # static unroll (<= 2)
        # 128-lane-aligned slice of this batch's real columns
        z = z_all[:, b * HW_PAD:b * HW_PAD + HW]                 # (C_OUT, HW)
        # SE block: spatial mean is a cheap lane reduce; the two tiny FCs stay off the
        # MXU (broadcast-multiply + reduce on VPU/XLU).
        pooled = jnp.sum(z, axis=1, keepdims=True) * inv_hw      # (C_OUT, 1)
        h = jnp.maximum(jnp.sum(w1 * pooled, axis=0, keepdims=True), 0.0)  # (1, C_RED)
        gate = jax.nn.sigmoid(jnp.sum(w2t * h, axis=1, keepdims=True))     # (C_OUT, 1)
        out_ref[b] = (z * gate).astype(out_ref.dtype)            # (C_OUT, HW)


def _use_per_batch_grid():
    """True on v7x-class chips (2 TensorCores) -> shard the batch across cores."""
    try:
        kind = jax.devices()[0].device_kind.lower()
    except Exception:
        return False
    return ("v7" in kind) or ("7x" in kind)


def freq_conv_block(x, conv_w, conv_b, gamma, beta, run_mean, run_var, se_w1, se_w2):
    """x: (B, C_IN, H, W) NCHW float32 -> (B, C_OUT, H_OUT, W) NCHW float32."""
    # ---- fold conv weight / bias / BN into matmul + per-channel affine; pack params ----
    wT = conv_w.reshape(C_OUT, K).astype(jnp.bfloat16)                  # (C_OUT, K) bf16
    bn_scale = gamma / jnp.sqrt(run_var + BN_EPS)                       # (C_OUT,)
    shift = (conv_b - run_mean) * bn_scale + beta                       # (C_OUT,)
    params = jnp.concatenate(
        [bn_scale[:, None], shift[:, None], se_w1, se_w2.T], axis=1)    # (C_OUT, 2+2*C_RED) f32

    # ---- glue: im2col via KH static strided slices (fusible, no gather HLO) ----
    x_pad = jnp.pad(x, ((0, 0), (0, 0), (PAD_H, PAD_H), (0, 0)))        # (B, Cin, H+10, W)
    taps = [x_pad[:, :, kh:kh + STRIDE_H * (H_OUT - 1) + 1:STRIDE_H, :] # (B, Cin, H_OUT, W)
            for kh in range(KH)]
    patches = jnp.stack(taps, axis=2)                                   # (B, Cin, KH, H_OUT, W)
    cols = patches.reshape(B, K, HW)                                    # contiguous reshape
    cols = jnp.transpose(cols, (1, 0, 2))                               # (K, B, HW)  minor dim kept
    cols = jnp.pad(cols, ((0, 0), (0, 0), (0, HW_PAD - HW)))            # (K, B, HW_PAD)
    cols = cols.reshape(K, B * HW_PAD).astype(jnp.bfloat16)             # (K, B*HW_PAD) bf16

    out_shape = jax.ShapeDtypeStruct((B, C_OUT, HW), jnp.float32)

    if _use_per_batch_grid():
        # v7x: 2 TensorCores per chip -> one batch element per core.
        out = pl.pallas_call(
            freqconv_se_kernel,
            out_shape=out_shape,
            grid=(B,),
            in_specs=[
                pl.BlockSpec((K, HW_PAD), lambda b: (0, b)),
                pl.BlockSpec((C_OUT, K), lambda b: (0, 0)),
                pl.BlockSpec((C_OUT, 2 + 2 * C_RED), lambda b: (0, 0)),
            ],
            out_specs=pl.BlockSpec((1, C_OUT, HW), lambda b: (b, 0, 0)),
            compiler_params=pltpu.CompilerParams(
                dimension_semantics=(pltpu.PARALLEL,)),
        )(cols, wT, params)
    else:
        # v5e / v6e: single TensorCore -> one grid-less call, whole arrays in VMEM
        # (no pipeline bookkeeping, no unused double buffers).
        out = pl.pallas_call(
            freqconv_se_kernel,
            out_shape=out_shape,
            in_specs=[
                pl.BlockSpec(memory_space=pltpu.MemorySpace.VMEM),
                pl.BlockSpec(memory_space=pltpu.MemorySpace.VMEM),
                pl.BlockSpec(memory_space=pltpu.MemorySpace.VMEM),
            ],
            out_specs=pl.BlockSpec(memory_space=pltpu.MemorySpace.VMEM),
        )(cols, wT, params)

    # channel-major kernel output -> NCHW is a free contiguous reshape
    return out.reshape(B, C_OUT, H_OUT, W)


# ---------------- pure-JAX reference (for correctness) ----------------
def reference(x, conv_w, conv_b, gamma, beta, run_mean, run_var, se_w1, se_w2):
    z = lax.conv_general_dilated(
        x, conv_w, window_strides=(STRIDE_H, 1),
        padding=((PAD_H, PAD_H), (0, 0)),
        dimension_numbers=("NCHW", "OIHW", "NCHW"))
    z = z + conv_b[None, :, None, None]
    z = (z - run_mean[None, :, None, None]) / jnp.sqrt(run_var + BN_EPS)[None, :, None, None]
    z = z * gamma[None, :, None, None] + beta[None, :, None, None]
    z = jnp.maximum(z, 0.0)
    y = jnp.mean(z, axis=(2, 3))                               # (B, C_OUT)
    h = jnp.maximum(y @ se_w1, 0.0)
    g = jax.nn.sigmoid(h @ se_w2)
    return z * g[:, :, None, None]


if __name__ == "__main__":
    key = jax.random.PRNGKey(0)
    ks = jax.random.split(key, 9)

    x = jax.random.normal(ks[0], (B, C_IN, H, W), jnp.float32)
    conv_w = jax.random.normal(ks[1], (C_OUT, C_IN, KH, 1), jnp.float32) * 0.1
    conv_b = jax.random.normal(ks[2], (C_OUT,), jnp.float32) * 0.1
    gamma = 1.0 + 0.1 * jax.random.normal(ks[3], (C_OUT,), jnp.float32)
    beta = 0.1 * jax.random.normal(ks[4], (C_OUT,), jnp.float32)
    run_mean = 0.1 * jax.random.normal(ks[5], (C_OUT,), jnp.float32)
    run_var = jnp.abs(jax.random.normal(ks[6], (C_OUT,), jnp.float32)) + 0.5
    se_w1 = jax.random.normal(ks[7], (C_OUT, C_RED), jnp.float32) * 0.2
    se_w2 = jax.random.normal(ks[8], (C_RED, C_OUT), jnp.float32) * 0.2

    out = freq_conv_block(x, conv_w, conv_b, gamma, beta, run_mean, run_var, se_w1, se_w2)
    out = jax.block_until_ready(out)

    ref = jax.block_until_ready(
        reference(x, conv_w, conv_b, gamma, beta, run_mean, run_var, se_w1, se_w2))
    np.testing.assert_allclose(np.asarray(out), np.asarray(ref), rtol=1e-2, atol=1e-2)

    print("KERNEL_OK")
</pallas_src>

<mosaic_0001>
module attributes {stable_mosaic.version = 11 : i64} {
  func.func @freqconv_se_kernel(%arg0: memref<40x512xbf16, #tpu.memory_space<vmem>>, %arg1: memref<32x40xbf16, #tpu.memory_space<vmem>>, %arg2: memref<32x6xf32, #tpu.memory_space<vmem>>, %arg3: memref<2x32x144xf32, #tpu.memory_space<vmem>>) attributes {dimension_semantics = [], scalar_prefetch = 0 : i64, scratch_operands = 0 : i64, tpu.core_type = #tpu.core_type<tc>} {
    %c0 = arith.constant 0 : index
    %c0_0 = arith.constant 0 : index
    %0 = vector.load %arg1[%c0, %c0_0] : memref<32x40xbf16, #tpu.memory_space<vmem>>, vector<32x40xbf16>
    %c0_1 = arith.constant 0 : index
    %c0_2 = arith.constant 0 : index
    %1 = vector.load %arg0[%c0_1, %c0_2] : memref<40x512xbf16, #tpu.memory_space<vmem>>, vector<40x512xbf16>
    %cst = arith.constant dense<0.000000e+00> : vector<32x512xf32>
    %2 = tpu.matmul %0, %1, %cst {dimension_numbers = #tpu.dot_dimension_numbers<[1], [0], [0], [1], [0, 0, 1, 1], [], []>} : vector<32x40xbf16>, vector<40x512xbf16>, vector<32x512xf32> -> vector<32x512xf32>
    %c0_3 = arith.constant 0 : index
    %c0_4 = arith.constant 0 : index
    %3 = vector.load %arg2[%c0_3, %c0_4] : memref<32x6xf32, #tpu.memory_space<vmem>>, vector<32x6xf32>
    %4 = vector.extract_strided_slice %3 {offsets = [0, 0], sizes = [32, 1], strides = [1, 1]} : vector<32x6xf32> to vector<32x1xf32>
    %5 = vector.extract_strided_slice %3 {offsets = [0, 1], sizes = [32, 1], strides = [1, 1]} : vector<32x6xf32> to vector<32x1xf32>
    %6 = vector.extract_strided_slice %3 {offsets = [0, 2], sizes = [32, 2], strides = [1, 1]} : vector<32x6xf32> to vector<32x2xf32>
    %7 = vector.extract_strided_slice %3 {offsets = [0, 4], sizes = [32, 2], strides = [1, 1]} : vector<32x6xf32> to vector<32x2xf32>
    %8 = vector.broadcast %4 : vector<32x1xf32> to vector<32x512xf32>
    %9 = arith.mulf %2, %8 : vector<32x512xf32>
    %10 = vector.broadcast %5 : vector<32x1xf32> to vector<32x512xf32>
    %11 = arith.addf %9, %10 : vector<32x512xf32>
    %cst_5 = arith.constant 0.000000e+00 : f32
    %12 = vector.broadcast %cst_5 : f32 to vector<32x512xf32>
    %13 = arith.maximumf %11, %12 : vector<32x512xf32>
    %14 = vector.extract_strided_slice %13 {offsets = [0, 0], sizes = [32, 144], strides = [1, 1]} : vector<32x512xf32> to vector<32x144xf32>
    %cst_6 = arith.constant dense<0.000000e+00> : vector<32xf32>
    %15 = vector.multi_reduction <add>, %14, %cst_6 [1] : vector<32x144xf32> to vector<32xf32>
    %16 = vector.shape_cast %15 : vector<32xf32> to vector<32x1xf32>
    %cst_7 = arith.constant 0.0069444445 : f32
    %17 = vector.broadcast %cst_7 : f32 to vector<32x1xf32>
    %18 = arith.mulf %16, %17 : vector<32x1xf32>
    %19 = vector.broadcast %18 : vector<32x1xf32> to vector<32x2xf32>
    %20 = arith.mulf %6, %19 : vector<32x2xf32>
    %cst_8 = arith.constant dense<0.000000e+00> : vector<2xf32>
    %21 = vector.multi_reduction <add>, %20, %cst_8 [0] : vector<32x2xf32> to vector<2xf32>
    %22 = vector.shape_cast %21 : vector<2xf32> to vector<1x2xf32>
    %cst_9 = arith.constant 0.000000e+00 : f32
    %23 = vector.broadcast %cst_9 : f32 to vector<1x2xf32>
    %24 = arith.maximumf %22, %23 : vector<1x2xf32>
    %25 = vector.broadcast %24 : vector<1x2xf32> to vector<32x2xf32>
    %26 = arith.mulf %7, %25 : vector<32x2xf32>
    %cst_10 = arith.constant dense<0.000000e+00> : vector<32xf32>
    %27 = vector.multi_reduction <add>, %26, %cst_10 [1] : vector<32x2xf32> to vector<32xf32>
    %28 = vector.shape_cast %27 : vector<32xf32> to vector<32x1xf32>
    %29 = arith.negf %28 : vector<32x1xf32>
    %30 = math.exp %29 : vector<32x1xf32>
    %cst_11 = arith.constant 1.000000e+00 : f32
    %31 = vector.broadcast %cst_11 : f32 to vector<32x1xf32>
    %32 = arith.addf %31, %30 : vector<32x1xf32>
    %33 = arith.divf %31, %32 : vector<32x1xf32>
    %34 = vector.broadcast %33 : vector<32x1xf32> to vector<32x144xf32>
    %35 = arith.mulf %14, %34 : vector<32x144xf32>
    %c0_12 = arith.constant 0 : index
    %c0_13 = arith.constant 0 : index
    %c0_14 = arith.constant 0 : index
    %36 = vector.load %arg3[%c0_12, %c0_13, %c0_14] : memref<2x32x144xf32, #tpu.memory_space<vmem>>, vector<1x32x144xf32>
    %37 = vector.shape_cast %36 : vector<1x32x144xf32> to vector<32x144xf32>
    %38 = vector.shape_cast %35 : vector<32x144xf32> to vector<1x32x144xf32>
    tpu.vector_store %arg3[%c0_12, %c0_13, %c0_14], %38 {strides = array<i32>} : memref<2x32x144xf32, #tpu.memory_space<vmem>>, vector<1x32x144xf32>,
    %39 = vector.extract_strided_slice %13 {offsets = [0, 256], sizes = [32, 144], strides = [1, 1]} : vector<32x512xf32> to vector<32x144xf32>
    %cst_15 = arith.constant dense<0.000000e+00> : vector<32xf32>
    %40 = vector.multi_reduction <add>, %39, %cst_15 [1] : vector<32x144xf32> to vector<32xf32>
    %41 = vector.shape_cast %40 : vector<32xf32> to vector<32x1xf32>
    %cst_16 = arith.constant 0.0069444445 : f32
    %42 = vector.broadcast %cst_16 : f32 to vector<32x1xf32>
    %43 = arith.mulf %41, %42 : vector<32x1xf32>
    %44 = vector.broadcast %43 : vector<32x1xf32> to vector<32x2xf32>
    %45 = arith.mulf %6, %44 : vector<32x2xf32>
    %cst_17 = arith.constant dense<0.000000e+00> : vector<2xf32>
    %46 = vector.multi_reduction <add>, %45, %cst_17 [0] : vector<32x2xf32> to vector<2xf32>
    %47 = vector.shape_cast %46 : vector<2xf32> to vector<1x2xf32>
    %cst_18 = arith.constant 0.000000e+00 : f32
    %48 = vector.broadcast %cst_18 : f32 to vector<1x2xf32>
    %49 = arith.maximumf %47, %48 : vector<1x2xf32>
    %50 = vector.broadcast %49 : vector<1x2xf32> to vector<32x2xf32>
    %51 = arith.mulf %7, %50 : vector<32x2xf32>
    %cst_19 = arith.constant dense<0.000000e+00> : vector<32xf32>
    %52 = vector.multi_reduction <add>, %51, %cst_19 [1] : vector<32x2xf32> to vector<32xf32>
    %53 = vector.shape_cast %52 : vector<32xf32> to vector<32x1xf32>
    %54 = arith.negf %53 : vector<32x1xf32>
    %55 = math.exp %54 : vector<32x1xf32>
    %cst_20 = arith.constant 1.000000e+00 : f32
    %56 = vector.broadcast %cst_20 : f32 to vector<32x1xf32>
    %57 = arith.addf %56, %55 : vector<32x1xf32>
    %58 = arith.divf %56, %57 : vector<32x1xf32>
    %59 = vector.broadcast %58 : vector<32x1xf32> to vector<32x144xf32>
    %60 = arith.mulf %39, %59 : vector<32x144xf32>
    %c1 = arith.constant 1 : index
    %c0_21 = arith.constant 0 : index
    %c0_22 = arith.constant 0 : index
    %61 = vector.load %arg3[%c1, %c0_21, %c0_22] : memref<2x32x144xf32, #tpu.memory_space<vmem>>, vector<1x32x144xf32>
    %62 = vector.shape_cast %61 : vector<1x32x144xf32> to vector<32x144xf32>
    %63 = vector.shape_cast %60 : vector<32x144xf32> to vector<1x32x144xf32>
    tpu.vector_store %arg3[%c1, %c0_21, %c0_22], %63 {strides = array<i32>} : memref<2x32x144xf32, #tpu.memory_space<vmem>>, vector<1x32x144xf32>,
    return
  }
}

</mosaic_0001>

<bundles_post_ra>
// kernel: tpu_custom_call.1
= control target key start
LH: loop header
LB: loop body
LE: loop exit
PB: predicated region body
PF: predicated region fallthrough
CT: control target
= control target key end

     0   :  { %8 = vsyncpa [#allocation3], 0  ;;  %s963_s0 = inlined_call_operand.hbm [shape: bf16[40,512], index: 0, kind: input, shape index: {}]   ;;  %s964_s1 = inlined_call_operand.vmem [shape: bf16[32,40], index: 1, kind: input, shape index: {}]   ;;  %s965_s2 = inlined_call_operand.vmem [shape: f32[32,6], index: 2, kind: input, shape index: {}]   ;;  %s966_s3 = inlined_call_operand.hbm [shape: f32[2,32,144], index: 3, kind: output, shape index: {}]  }
   0x1   :  { %9 = vsyncpa [#allocation4], 0  ;;  %s707_s12 = smov [#allocation2]   ;;  %s659_s16 = scalar_lea.hbm %s963_s0, 1280 }
   0x2   :  { %s15_s13 = sshll.u32 %s707_s12, 4  ;;  %p660_p0 = scmp.ne.s32.totalorder %s963_s0, %s659_s16  ;;  %s16_s13 = int_to_ptr.vmem [resolvable:$true] %s15_s13 }
   0x3   :  { %p663_p1 = scmp.lt.u32.totalorder %s659_s16, %s963_s0 }
   0x5   :  { %p665_p2 = pnand %p663_p1, %p660_p0 }
   0x7   :  { %668 = shalt.err (!%p665_p2)
}
   0x8   :  { %s669_s21 = scalar_lea.vmem %s16_s13, 1280  ;;  %p674_p4 = scmp.lt.s32.totalorder %s16_s13, %s16_s13 }
   0x9   :  { %p670_p3 = scmp.ne.s32.totalorder %s16_s13, %s669_s21  ;;  %p675_p5 = scmp.lt.s32.totalorder %s669_s21, %s669_s21 }
   0xb   :  { %p676_p6 = por %p675_p5, %p674_p4 }
   0xd   :  { %p677_p7 = pnand %p676_p6, %p670_p3 }
   0xf   :  { %680 = shalt.err (!%p677_p7)
}
  0x10   :  { %s708_s22 = smov 256   ;;  %s709_s23 = smov 16  }
  0x11   :  { %21 = dma.hbm_to_vmem [thread:$0]  %s963_s0, 1280, %s16_s13, [#allocation3], %s708_s22, %s708_s22, %s709_s23  }
  0x12   :  { %703 = dma.done.wait [#allocation3], 1280  }
  0x13   :  { %704 = vsyncadd [#allocation3], 4294966016  ;;  %v710_v0 = vmov 0   ;;  %v609_v1 = vld [vmem:[#allocation2 + $0x4] ss:$16 sps:$4 sm:$0xff]   ;;  %vm111_vm0 = vcmask 1043456  }
  0x14   :  { %156 = vmatprep.mubr.bf16.mxu0 %v710_v0  ;;  %209 = vmatprep.mubr.bf16.mxu1 %v710_v0  ;;  %v611_v2 = vld [vmem:[#allocation2 + $0xc] ss:$16 sps:$4 sm:$0xff]   ;;  %v613_v3 = vld [vmem:[#allocation2] ss:$16 sps:$4 sm:$0xff]   ;;  %v614_v4 = vld [vmem:[#allocation2 + $0x8] ss:$16 sps:$4 sm:$0xff]  }
  0x15   :  { %603 = vset.pattern.permute.xlu0 %v710_v0  ;;  %604 = vset.pattern.permute.xlu1 %v710_v0  ;;  %v615_v5 = vld [vmem:[#allocation2 + $0x24] ss:$16 sps:$4 sm:$0xff]   ;;  %v617_v6 = vld [vmem:[#allocation2 + $0x2c] ss:$16 sps:$4 sm:$0xff]   ;;  %v619_v7 = vld [vmem:[#allocation2 + $0x20] ss:$16 sps:$4 sm:$0xff]  }
  0x16   :  { %124 = vmatprep.subr.bf16.mxu0 %v609_v1  ;;  %177 = vmatprep.subr.bf16.mxu1 %v611_v2  ;;  %v620_v8 = vld [vmem:[#allocation2 + $0x28] ss:$16 sps:$4 sm:$0xff]   ;;  %v42_v9 = vld [vmem:[#allocation2 + $0x40] sm:$0xff]  ;;  %v758_v16 = vld [vmem:[%s965_s2 + $0x10] sm:$0xff]  ;;  %vm104_vm1 = vcmask 326656   ;;  %v711_v21 = vmov 1  }
  0x17   :  { %125 = vmatpush1.bf16.msra.mxu0 %v613_v3  ;;  %178 = vmatpush1.bf16.msra.mxu1 %v614_v4  ;;  %v43_v10 = vld [vmem:[#allocation2 + $0x48] sm:$0xff]  ;;  %v578_v11 = vcombine.high %v42_v9, %v42_v9  ;;  %v577_v13 = vcombine.low %v42_v9, %v42_v9  ;;  %v753_v15 = vld [vmem:[%s965_s2] sm:$0xff]  ;;  %v781_v23 = vld [vmem:[%s965_s2 + $0x18] sm:$0xff]  ;;  %vm318_vm2 = vcmask 130048   ;;  %vm343_vm3 = vcmask 31760   ;;  %s714_s10 = smov [#allocation5]  }
  0x18   :  { %126 = vmatprep.subr.bf16.mxu0 %v615_v5  ;;  %179 = vmatprep.subr.bf16.mxu1 %v617_v6  ;;  %v580_v12 = vcombine.high %v43_v10, %v43_v10  ;;  %v579_v14 = vcombine.low %v43_v10, %v43_v10  ;;  %v625_v19 = vld [vmem:[%s964_s1] sm:$0xff]   ;;  %v768_v20 = vld [vmem:[%s965_s2 + $0x8] sm:$0xff]  ;;  %s713_s2 = smov 124   ;;  %vm382_vm4 = vcmask 15360   ;;  %s555_s11 = sshll.u32 %s714_s10, 4  ;;  %s556_s11 = int_to_ptr.vmem [resolvable:$true] %s555_s11 }
  0x19   :  { %v113_v17 = vsel %vm111_vm0, %v577_v13, 0  ;;  %236 = vperm.xlu0 %603, %v753_v15   ;;  %246 = vperm.xlu1 %604, %v758_v16   ;;  %v626_v22 = vld [vmem:[%s964_s1 + $0x8] sm:$0xff]   ;;  %s712_s1 = smov 2   ;;  %s681_s12 = scalar_lea.vmem %s556_s11, 2048 }
  0x1a   :  { %v119_v18 = vsel %vm111_vm0, %v579_v14, 0  ;;  %p682_p8 = scmp.ne.s32.totalorder %s556_s11, %s681_s12  ;;  %p686_p9 = scmp.lt.s32.totalorder %s556_s11, %s556_s11 }
  0x1b   :  { %127 = vmatpush1.bf16.msra.mxu0 %v619_v7  ;;  %180 = vmatpush1.bf16.msra.mxu1 %v620_v8  ;;  %p687_p10 = scmp.lt.s32.totalorder %s681_s12, %s681_s12 }
  0x1c   :  { %581 = vmatprep.subr.msk.bf16.mxu0 %vm111_vm0, %v578_v11  ;;  %584 = vmatprep.subr.msk.bf16.mxu1 %vm111_vm0, %v580_v12 }
  0x1d   :  { %241 = vperm.xlu0 %603, %v768_v20   ;;  %605 = vset.pattern.permute.xlu1 %v711_v21  ;;  %p688_p11 = por %p687_p10, %p686_p9 }
  0x1e   :  { %271 = vperm.xlu1 %605, %v753_v15  }
  0x1f   :  { %129 = vmatpush1.bf16.msra.mxu0 %v113_v17  ;;  %182 = vmatpush1.bf16.msra.mxu1 %v119_v18  ;;  %p689_p12 = pnand %p688_p11, %p682_p8 }
  0x21   :  { %606 = vset.pattern.permute.xlu0 %v711_v21 }
  0x22   :  { %582 = vmatmul.mubr.msk.bf16.vlgmr.msra.gmra.mrb[0].mxu0 %vm104_vm1, %v625_v19  ;;  %585 = vmatmul.mubr.msk.bf16.vlgmr.msra.gmra.mrb[0].mxu1 %vm104_vm1, %v625_v19 }
  0x23   :  { %166 = vmatprep.mubr.bf16.mxu0 %v710_v0  ;;  %219 = vmatprep.mubr.bf16.mxu1 %v710_v0 }
  0x24   :  { %275 = vperm.xlu0 %606, %v768_v20   ;;  %607 = vset.pattern.permute.xlu1 %v710_v0 }
  0x25   :  { %251 = vperm.xlu1 %607, %v781_v23  }
  0x28   :  { %283 = vperm.xlu0 %606, %v781_v23  }
  0x29   :  { %608 = vset.pattern.permute.xlu1 %v711_v21 }
  0x2a   :  { %583 = vmatmul.mubr.msk.bf16.gmra.mrb[4].mxu0 %vm104_vm1, %v626_v22  ;;  %586 = vmatmul.mubr.msk.bf16.gmra.mrb[4].mxu1 %vm104_vm1, %v626_v22 }
  0x2b   :  { %279 = vperm.xlu1 %608, %v758_v16  }
  0x98   :  { %v247_v24 = vpop.permute.xlu1 %246  ;;  %v237_v25 = vpop.permute.xlu0 %236 }
  0x9c   :  { %v242_v27 = vpop.permute.xlu0 %241 }
  0x9d   :  { %v272_v26 = vpop.permute.xlu1 %271 }
  0xa3   :  { %v276_v47 = vpop.permute.xlu0 %275 }
  0xa4   :  { %v252_v28 = vpop.permute.xlu1 %251 }
  0xaa   :  { %v280_v54 = vpop.permute.xlu1 %279 }
  0xf5   :  { %v158_v29 = vpop.f32.mrb[0].mxu0  ;;  %v211_v30 = vpop.f32.mrb[0].mxu1 }
  0xf6   :  { %v254_v31 = vmul.f32 %v237_v25, %v158_v29  ;;  %v256_v32 = vmul.f32 %v237_v25, %v211_v30  ;;  %v160_v33 = vpop.f32.mrb[1].mxu0  ;;  %v213_v34 = vpop.f32.mrb[1].mxu1 }
  0xf7   :  { %v255_v35 = vmul.f32 %v237_v25, %v160_v33  ;;  %v257_v36 = vmul.f32 %v237_v25, %v213_v34  ;;  %v162_v37 = vpop.f32.mrb[2].mxu0  ;;  %v215_v38 = vpop.f32.mrb[2].mxu1 }
  0xf8   :  { %v258_v39 = vmul.f32 %v242_v27, %v162_v37  ;;  %v260_v40 = vmul.f32 %v242_v27, %v215_v38  ;;  %v164_v41 = vpop.f32.mrb[3].mxu0  ;;  %v217_v42 = vpop.f32.mrb[3].mxu1  ;;  %v788_v43 = vadd.f32 %v272_v26, %v256_v32  ;;  %v790_v44 = vadd.f32 %v272_v26, %v254_v31 }
  0xf9   :  { %v792_v45 = vadd.f32 %v272_v26, %v255_v35  ;;  %v794_v46 = vadd.f32 %v272_v26, %v257_v36  ;;  %v259_v48 = vmul.f32 %v242_v27, %v164_v41  ;;  %v261_v49 = vmul.f32 %v242_v27, %v217_v42  ;;  %v284_v26 = vpop.permute.xlu0 %283 }
  0xfa   :  { %v304_v55 = vmax.f32 %v788_v43, 0.0  ;;  %v302_v56 = vmax.f32 %v790_v44, 0.0  ;;  %v804_v57 = vadd.f32 %v276_v47, %v260_v40  ;;  %v806_v58 = vadd.f32 %v276_v47, %v258_v39 }
  0xfb   :  { %v303_v50 = vmax.f32 %v792_v45, 0.0  ;;  %v305_v51 = vmax.f32 %v794_v46, 0.0  ;;  %v798_v52 = vadd.f32 %v276_v47, %v259_v48  ;;  %v800_v53 = vadd.f32 %v276_v47, %v261_v49 }
  0xfc   :  { %v308_v18 = vmax.f32 %v804_v57, 0.0  ;;  %v306_v19 = vmax.f32 %v806_v58, 0.0 }
  0xfd   :  { %v307_v59 = vmax.f32 %v798_v52, 0.0  ;;  %v309_v60 = vmax.f32 %v800_v53, 0.0  ;;  %v168_v61 = vpop.f32.mrb[4].mxu0  ;;  %v221_v62 = vpop.f32.mrb[4].mxu1  ;;  %v435_v63 = vsel %vm318_vm2, %v305_v51, 0.0  ;;  %v319_v0 = vsel %vm318_vm2, %v303_v50, 0.0 }
  0xfe   :  { %v262_v1 = vmul.f32 %v247_v24, %v168_v61  ;;  %v264_v2 = vmul.f32 %v247_v24, %v221_v62  ;;  %v170_v3 = vpop.f32.mrb[5].mxu0  ;;  %v223_v4 = vpop.f32.mrb[5].mxu1  ;;  %v436_v5 = vadd.f32 %v435_v63, %v304_v55  ;;  %v320_v6 = vadd.f32 %v319_v0, %v302_v56 }
  0xff   :  { %v263_v7 = vmul.f32 %v247_v24, %v170_v3  ;;  %v265_v8 = vmul.f32 %v247_v24, %v223_v4  ;;  %v172_v9 = vpop.f32.mrb[6].mxu0  ;;  %v225_v10 = vpop.f32.mrb[6].mxu1  ;;  %v439_v11 = vsel %vm318_vm2, %v309_v60, 0.0  ;;  %v323_v12 = vsel %vm318_vm2, %v307_v59, 0.0 }
 0x100   :  { %v268_v13 = vmul.f32 %v252_v28, %v225_v10  ;;  %437 = vadd.xlane.f32.xlu0 %v436_v5  ;;  %v227_v14 = vpop.f32.mrb[7].mxu1  ;;  %321 = vadd.xlane.f32.xlu1 %v320_v6  ;;  %v174_v17 = vpop.f32.mrb[7].mxu0  ;;  %v266_v21 = vmul.f32 %v252_v28, %v172_v9  ;;  %v828_v25 = vadd.f32 %v280_v54, %v264_v2 }
 0x101   :  { %v269_v22 = vmul.f32 %v252_v28, %v227_v14  ;;  %v267_v24 = vmul.f32 %v252_v28, %v174_v17  ;;  %v440_v27 = vadd.f32 %v439_v11, %v308_v18  ;;  %v324_v29 = vadd.f32 %v323_v12, %v306_v19 }
 0x102   :  { %v834_v30 = vadd.f32 %v280_v54, %v265_v8  ;;  %v836_v31 = vadd.f32 %v280_v54, %v262_v1  ;;  %v842_v34 = vadd.f32 %v280_v54, %v263_v7  ;;  %v844_v28 = vadd.f32 %v284_v26, %v268_v13 }
 0x103   :  { %v838_v32 = vadd.f32 %v284_v26, %v269_v22  ;;  %v840_v33 = vadd.f32 %v284_v26, %v267_v24  ;;  %v312_v38 = vmax.f32 %v828_v25, 0.0  ;;  %v851_v40 = vadd.f32 %v284_v26, %v266_v21 }
 0x104   :  { %441 = vadd.xlane.f32.xlu1 %v440_v27  ;;  %325 = vadd.xlane.f32.xlu0 %v324_v29  ;;  %v313_v35 = vmax.f32 %v834_v30, 0.0  ;;  %v311_v39 = vmax.f32 %v842_v34, 0.0  ;;  %v310_v42 = vmax.f32 %v836_v31, 0.0  ;;  %v316_v61 = vmax.f32 %v844_v28, 0.0 }
 0x105   :  { %v317_v36 = vmax.f32 %v838_v32, 0.0  ;;  %v315_v37 = vmax.f32 %v840_v33, 0.0  ;;  %v314_v63 = vmax.f32 %v851_v40, 0.0 }
 0x106   :  { %v443_v41 = vsel %vm318_vm2, %v313_v35, 0.0  ;;  %v327_v48 = vsel %vm318_vm2, %v311_v39, 0.0 }
 0x107   :  { %v444_v47 = vadd.f32 %v443_v41, %v312_v38  ;;  %v328_v49 = vadd.f32 %v327_v48, %v310_v42  ;;  %v447_v54 = vsel %vm318_vm2, %v317_v36, 0.0  ;;  %v331_v62 = vsel %vm318_vm2, %v315_v37, 0.0 }
 0x108   :  { %v448_v0 = vadd.f32 %v447_v54, %v316_v61  ;;  %v332_v1 = vadd.f32 %v331_v62, %v314_v63 }
 0x109   :  { %445 = vadd.xlane.f32.xlu1 %v444_v47  ;;  %329 = vadd.xlane.f32.xlu0 %v328_v49 }
 0x10d   :  { %449 = vadd.xlane.f32.xlu1 %v448_v0  ;;  %333 = vadd.xlane.f32.xlu0 %v332_v1 }
 0x18d   :  { %v438_v2 = vpop.xlane.xlu0 %437  ;;  %v322_v3 = vpop.xlane.xlu1 %321 }
 0x18e   :  { %v451_v8 = vmul.f32 0.0069444445, %v438_v2  ;;  %v335_v9 = vmul.f32 0.0069444445, %v322_v3 }
 0x190   :  { %v455_v13 = vmul.f32 %v451_v8, %v753_v15  ;;  %v339_v21 = vmul.f32 %v335_v9, %v753_v15 }
 0x191   :  { %v442_v4 = vpop.xlane.xlu1 %441  ;;  %v326_v5 = vpop.xlane.xlu0 %325 }
 0x192   :  { %v452_v6 = vmul.f32 0.0069444445, %v442_v4  ;;  %v336_v7 = vmul.f32 0.0069444445, %v326_v5  ;;  %v459_v47 = vsel %vm343_vm3, %v455_v13, 0.0  ;;  %v344_v62 = vsel %vm343_vm3, %v339_v21, 0.0 }
 0x194   :  { %v456_v10 = vmul.f32 %v452_v6, %v768_v20  ;;  %v340_v11 = vmul.f32 %v336_v7, %v768_v20 }
 0x196   :  { %v446_v12 = vpop.xlane.xlu1 %445  ;;  %v330_v17 = vpop.xlane.xlu0 %329  ;;  %v460_v24 = vsel %vm343_vm3, %v456_v10, 0.0  ;;  %v345_v27 = vsel %vm343_vm3, %v340_v11, 0.0 }
 0x197   :  { %v453_v14 = vmul.f32 0.0069444445, %v446_v12  ;;  %v337_v22 = vmul.f32 0.0069444445, %v330_v17  ;;  %v461_v0 = vadd.f32 %v460_v24, %v459_v47  ;;  %v346_v3 = vadd.f32 %v345_v27, %v344_v62 }
 0x199   :  { %v457_v26 = vmul.f32 %v453_v14, %v758_v16  ;;  %v341_v29 = vmul.f32 %v337_v22, %v758_v16 }
 0x19a   :  { %v450_v41 = vpop.xlane.xlu1 %449  ;;  %v334_v54 = vpop.xlane.xlu0 %333 }
 0x19b   :  { %v462_v48 = vsel %vm343_vm3, %v457_v26, 0.0  ;;  %v454_v49 = vmul.f32 0.0069444445, %v450_v41  ;;  %v347_v1 = vsel %vm343_vm3, %v341_v29, 0.0  ;;  %v338_v2 = vmul.f32 0.0069444445, %v334_v54 }
 0x19c   :  { %v463_v5 = vadd.f32 %v462_v48, %v461_v0  ;;  %v348_v7 = vadd.f32 %v347_v1, %v346_v3 }
 0x19d   :  { %v458_v4 = vmul.f32 %v454_v49, %v781_v23  ;;  %v342_v6 = vmul.f32 %v338_v2, %v781_v23 }
 0x19f   :  { %v464_v8 = vsel %vm343_vm3, %v458_v4, 0.0  ;;  %v349_v10 = vsel %vm343_vm3, %v342_v6, 0.0 }
 0x1a0   :  { %v465_v9 = vadd.f32 %v464_v8, %v463_v5  ;;  %v350_v11 = vadd.f32 %v349_v10, %v348_v7 }
 0x1a2   :  { %v466_v12 = vrot.slane %v465_v9, 4  ;;  %v351_v13 = vrot.slane %v350_v11, 4 }
 0x1a4   :  { %v467_v14 = vadd.f32 %v466_v12, %v465_v9  ;;  %v352_v17 = vadd.f32 %v351_v13, %v350_v11 }
 0x1a6   :  { %v468_v21 = vrot.slane %v467_v14, 2  ;;  %v353_v22 = vrot.slane %v352_v17, 2 }
 0x1a8   :  { %v469_v24 = vadd.f32 %v468_v21, %v467_v14  ;;  %v354_v26 = vadd.f32 %v353_v22, %v352_v17 }
 0x1aa   :  { %v470_v27 = vrot.slane %v469_v24, 1  ;;  %v355_v29 = vrot.slane %v354_v26, 1 }
 0x1ac   :  { %v471_v41 = vadd.f32 %v470_v27, %v469_v24  ;;  %v356_v47 = vadd.f32 %v355_v29, %v354_v26 }
 0x1ae   :  { %v472_v48 = vmax.f32 %v471_v41, 0.0  ;;  %v357_v49 = vmax.f32 %v356_v47, 0.0 }
 0x1b0   :  { %474 = vrot.lane.b32.xlu1 %v472_v48, %s712_s1  ;;  %359 = vrot.lane.b32.xlu0 %v357_v49, %s712_s1 }
 0x222   :  { %v360_v54 = vpop.permute.xlu0 %359  ;;  %v475_v3 = vpop.permute.xlu1 %474 }
 0x223   :  { %v363_v62 = vmul.f32 %v360_v54, %v768_v20  ;;  %v362_v0 = vmul.f32 %v360_v54, %v753_v15  ;;  %v365_v1 = vmul.f32 %v360_v54, %v781_v23  ;;  %v364_v2 = vmul.f32 %v360_v54, %v758_v16 }
 0x224   :  { %v478_v4 = vmul.f32 %v475_v3, %v768_v20  ;;  %v477_v5 = vmul.f32 %v475_v3, %v753_v15  ;;  %v480_v6 = vmul.f32 %v475_v3, %v781_v23  ;;  %v479_v7 = vmul.f32 %v475_v3, %v758_v16 }
 0x225   :  { %372 = vrot.lane.b32.xlu0 %v363_v62, %s713_s2  ;;  %370 = vrot.lane.b32.xlu1 %v362_v0, %s713_s2 }
 0x229   :  { %376 = vrot.lane.b32.xlu0 %v365_v1, %s713_s2  ;;  %374 = vrot.lane.b32.xlu1 %v364_v2, %s713_s2 }
 0x22d   :  { %487 = vrot.lane.b32.xlu0 %v478_v4, %s713_s2  ;;  %485 = vrot.lane.b32.xlu1 %v477_v5, %s713_s2 }
 0x231   :  { %491 = vrot.lane.b32.xlu0 %v480_v6, %s713_s2  ;;  %489 = vrot.lane.b32.xlu1 %v479_v7, %s713_s2 }
 0x297   :  { %v373_v8 = vpop.permute.xlu0 %372  ;;  %v371_v9 = vpop.permute.xlu1 %370 }
 0x298   :  { %v386_v10 = vsel %vm382_vm4, %v373_v8, 0.0  ;;  %v383_v11 = vsel %vm382_vm4, %v371_v9, 0.0 }
 0x299   :  { %387 = vadd.xlane.f32.xlu0 %v386_v10  ;;  %384 = vadd.xlane.f32.xlu1 %v383_v11 }
 0x29b   :  { %v377_v20 = vpop.permute.xlu0 %376  ;;  %v375_v12 = vpop.permute.xlu1 %374 }
 0x29c   :  { %v392_v15 = vsel %vm382_vm4, %v377_v20, 0.0  ;;  %v389_v13 = vsel %vm382_vm4, %v375_v12, 0.0 }
 0x29d   :  { %393 = vadd.xlane.f32.xlu1 %v392_v15  ;;  %390 = vadd.xlane.f32.xlu0 %v389_v13 }
 0x29f   :  { %v488_v16 = vpop.permute.xlu0 %487  ;;  %v486_v23 = vpop.permute.xlu1 %485 }
 0x2a0   :  { %v500_v14 = vsel %vm382_vm4, %v488_v16, 0.0  ;;  %v497_v17 = vsel %vm382_vm4, %v486_v23, 0.0 }
 0x2a1   :  { %501 = vadd.xlane.f32.xlu1 %v500_v14  ;;  %498 = vadd.xlane.f32.xlu0 %v497_v17 }
 0x2a3   :  { %v492_v21 = vpop.permute.xlu0 %491  ;;  %v490_v22 = vpop.permute.xlu1 %489 }
 0x2a4   :  { %v506_v24 = vsel %vm382_vm4, %v492_v21, 0.0  ;;  %v503_v26 = vsel %vm382_vm4, %v490_v22, 0.0 }
 0x2a5   :  { %507 = vadd.xlane.f32.xlu1 %v506_v24  ;;  %504 = vadd.xlane.f32.xlu0 %v503_v26 }
 0x326   :  { %v388_v27 = vpop.xlane.xlu0 %387  ;;  %v385_v29 = vpop.xlane.xlu1 %384 }
 0x327   :  { %v588_v41 = vmul.f32 -1.442695, %v388_v27  ;;  %v587_v47 = vmul.f32 -1.442695, %v385_v29 }
 0x329   :  { %627 = vpow2.f32 %v588_v41 }
 0x32a   :  { %629 = vpow2.f32 %v587_v47  ;;  %v391_v48 = vpop.xlane.xlu0 %390  ;;  %v394_v49 = vpop.xlane.xlu1 %393 }
 0x32b   :  { %v589_v54 = vmul.f32 -1.442695, %v391_v48  ;;  %v590_v62 = vmul.f32 -1.442695, %v394_v49 }
 0x32d   :  { %631 = vpow2.f32 %v589_v54 }
 0x32e   :  { %633 = vpow2.f32 %v590_v62  ;;  %v499_v0 = vpop.xlane.xlu0 %498  ;;  %v502_v1 = vpop.xlane.xlu1 %501 }
 0x32f   :  { %v591_v2 = vmul.f32 -1.442695, %v499_v0  ;;  %v592_v3 = vmul.f32 -1.442695, %v502_v1 }
 0x331   :  { %635 = vpow2.f32 %v591_v2 }
 0x332   :  { %637 = vpow2.f32 %v592_v3  ;;  %v505_v4 = vpop.xlane.xlu0 %504  ;;  %v508_v5 = vpop.xlane.xlu1 %507 }
 0x333   :  { %v628_v6 = vpop.eup %627  ;;  %v593_v7 = vmul.f32 -1.442695, %v505_v4  ;;  %v594_v10 = vmul.f32 -1.442695, %v508_v5 }
 0x334   :  { %v630_v8 = vpop.eup %629  ;;  %v408_v9 = vadd.f32 1.0, %v628_v6 }
 0x335   :  { %v407_v11 = vadd.f32 1.0, %v630_v8  ;;  %639 = vpow2.f32 %v593_v7 }
 0x336   :  { %641 = vrcp.f32 %v408_v9 }
 0x337   :  { %v632_v20 = vpop.eup %631  ;;  %643 = vrcp.f32 %v407_v11 }
 0x338   :  { %v634_v12 = vpop.eup %633  ;;  %v409_v15 = vadd.f32 1.0, %v632_v20  ;;  %645 = vpow2.f32 %v594_v10 }
 0x339   :  { %v410_v13 = vadd.f32 1.0, %v634_v12 }
 0x33a   :  { %647 = vrcp.f32 %v409_v15 }
 0x33b   :  { %v636_v16 = vpop.eup %635  ;;  %649 = vrcp.f32 %v410_v13 }
 0x33c   :  { %v638_v23 = vpop.eup %637  ;;  %v521_v14 = vadd.f32 1.0, %v636_v16 }
 0x33d   :  { %v522_v17 = vadd.f32 1.0, %v638_v23 }
 0x33e   :  { %651 = vrcp.f32 %v521_v14 }
 0x33f   :  { %v640_v21 = vpop.eup %639  ;;  %653 = vrcp.f32 %v522_v17 }
 0x340   :  { %v642_v22 = vpop.eup %641  ;;  %v523_v24 = vadd.f32 1.0, %v640_v21 }
 0x341   :  { %v644_v26 = vpop.eup %643  ;;  %v421_v27 = vmul.f32 %v642_v22, %v306_v19  ;;  %v422_v29 = vmul.f32 %v642_v22, %v307_v59 }
 0x342   :  { %v646_v41 = vpop.eup %645  ;;  %v419_v47 = vmul.f32 %v644_v26, %v302_v56  ;;  %v420_v48 = vmul.f32 %v644_v26, %v303_v50  ;;  %655 = vrcp.f32 %v523_v24 }
 0x343   :  { %429 = vst [vmem:[#allocation5 + $0x10] sm:$0xff] %v421_v27  ;;  %430 = vst.msk [vmem:[#allocation5 + $0x18] sm:$0xff] %vm318_vm2, %v422_v29  ;;  %v524_v49 = vadd.f32 1.0, %v646_v41 }
 0x344   :  { %v648_v54 = vpop.eup %647  ;;  %427 = vst [vmem:[#allocation5] sm:$0xff] %v419_v47  ;;  %428 = vst.msk [vmem:[#allocation5 + $0x8] sm:$0xff] %vm318_vm2, %v420_v48 }
 0x345   :  { %v650_v58 = vpop.eup %649  ;;  %v423_v52 = vmul.f32 %v648_v54, %v310_v42  ;;  %v424_v44 = vmul.f32 %v648_v54, %v311_v39  ;;  %657 = vrcp.f32 %v524_v49 }
 0x346   :  { %v425_v45 = vmul.f32 %v650_v58, %v314_v63  ;;  %v426_v50 = vmul.f32 %v650_v58, %v315_v37 }
 0x347   :  { %431 = vst [vmem:[#allocation5 + $0x20] sm:$0xff] %v423_v52  ;;  %432 = vst.msk [vmem:[#allocation5 + $0x28] sm:$0xff] %vm318_vm2, %v424_v44 }
 0x348   :  { %v652_v56 = vpop.eup %651  ;;  %433 = vst [vmem:[#allocation5 + $0x30] sm:$0xff] %v425_v45  ;;  %434 = vst.msk [vmem:[#allocation5 + $0x38] sm:$0xff] %vm318_vm2, %v426_v50 }
 0x349   :  { %v654_v59 = vpop.eup %653  ;;  %v533_v19 = vmul.f32 %v652_v56, %v304_v55  ;;  %v534_v31 = vmul.f32 %v652_v56, %v305_v51 }
 0x34a   :  { %v535_v34 = vmul.f32 %v654_v59, %v308_v18  ;;  %v536_v33 = vmul.f32 %v654_v59, %v309_v60 }
 0x34b   :  { %542 = vst [vmem:[#allocation5 + $0x40] sm:$0xff] %v533_v19  ;;  %543 = vst.msk [vmem:[#allocation5 + $0x48] sm:$0xff] %vm318_vm2, %v534_v31 }
 0x34c   :  { %v656_v37 = vpop.eup %655  ;;  %544 = vst [vmem:[#allocation5 + $0x50] sm:$0xff] %v535_v34  ;;  %545 = vst.msk [vmem:[#allocation5 + $0x58] sm:$0xff] %vm318_vm2, %v536_v33 }
 0x34d   :  { %v537_v43 = vmul.f32 %v656_v37, %v312_v38  ;;  %v538_v46 = vmul.f32 %v656_v37, %v313_v35 }
 0x34f   :  { %v658_v51 = vpop.eup %657  ;;  %546 = vst [vmem:[#allocation5 + $0x60] sm:$0xff] %v537_v43  ;;  %547 = vst.msk [vmem:[#allocation5 + $0x68] sm:$0xff] %vm318_vm2, %v538_v46 }
 0x350   :  { %v539_v53 = vmul.f32 %v658_v51, %v316_v61  ;;  %v540_v55 = vmul.f32 %v658_v51, %v317_v36 }
 0x352   :  { %548 = vst [vmem:[#allocation5 + $0x70] sm:$0xff] %v539_v53  ;;  %549 = vst.msk [vmem:[#allocation5 + $0x78] sm:$0xff] %vm318_vm2, %v540_v55 }
 0x353   :  { %692 = shalt.err (!%p689_p12)
}
 0x354   :  { %s693_s15 = scalar_lea.hbm %s966_s3, 2048 }
 0x355   :  { %p694_p13 = scmp.ne.s32.totalorder %s966_s3, %s693_s15  ;;  %p697_p0 = scmp.lt.u32.totalorder %s693_s15, %s966_s3 }
 0x357   :  { %p699_p1 = pnand %p697_p0, %p694_p13 }
 0x359   :  { %702 = shalt.err (!%p699_p1)
}
 0x35a   :  { %561 = dma.vmem_to_hbm [thread:$0]  %s556_s11, 2048, %s966_s3, [#allocation4], %s708_s22, %s708_s22, %s709_s23  }
 0x35b   :  { %705 = dma.done.wait [#allocation4], 2048  }
 0x35c   :  { %706 = vsyncadd [#allocation4], 4294965248 }
 0x35d   :  { %565 = vsyncpa [#allocation3], 1 }
 0x35e   :  { %566 = vsyncpa [#allocation4], 1 }

</bundles_post_ra>
